<compile_context>
chip_gen: v7x
topology: tpu7x:2x2x1
jax: 0.10.0
libtpu: 0.0.40
codegen_flags: <defaults>
</compile_context>

<pallas_src>
import jax
import jax.numpy as jnp
from jax import lax
from jax.experimental import pallas as pl
from jax.experimental.pallas import tpu as pltpu

# ----------------------------------------------------------------------------
# Model configuration (small, deterministic, consistent with the torch module)
# ----------------------------------------------------------------------------
DEEP_COLUMNS_IDX = {"age": 0, "gender": 1, "career": 2, "income": 3}
EMBEDDING_COLUMNS_DICT = {"age": (10, 8), "gender": (2, 4), "career": (5, 8)}
HIDDEN_SIZE_LIST = [32, 16]
DROPOUTS = [0.5, 0.5]          # identity at inference; TODO(synk): train-mode dropout not implemented
WIDE_INPUT_DIM = 8
OUTPUT_DIM = 1                 # wide_output_dim == deep_output_dim (asserted in torch forward)

EMB_COLS = list(EMBEDDING_COLUMNS_DICT.keys())
CONT_COLS = [c for c in DEEP_COLUMNS_IDX if c not in EMBEDDING_COLUMNS_DICT]
EMB_NUMS = [EMBEDDING_COLUMNS_DICT[c][0] for c in EMB_COLS]    # vocab sizes
EMB_DIMS = [EMBEDDING_COLUMNS_DICT[c][1] for c in EMB_COLS]    # emb dims
EMBEDDING_OUT = sum(EMB_DIMS) + len(CONT_COLS)                 # 8+4+8+1 = 21

VOC_OFFSETS = []
_o = 0
for _n in EMB_NUMS:
    VOC_OFFSETS.append(_o)
    _o += _n
TOTAL_VOCAB = _o                                               # 17
N_DEEP_COLS = len(DEEP_COLUMNS_IDX)                            # 4
# combined layer-1 feature slab: wide(8) | one-hot(17) | cont(1) | bias-ones(1)
FEAT_DIM = WIDE_INPUT_DIM + TOTAL_VOCAB + len(CONT_COLS) + 1   # 27
H1, H2 = HIDDEN_SIZE_LIST                                      # 32, 16

LEAKY_SLOPE = 0.01             # torch nn.LeakyReLU default negative_slope
                               # NOTE: the wide-branch fusion below relies on
                               # BOTH branches using LeakyReLU with this slope.


# ----------------------------------------------------------------------------
# Pallas kernel: one-hot build + single fused layer-1 (wide + deep + embeddings
# + bias) matmul + small MLP tail + sigmoid.  Every batched tensor is
# [features, batch_tile] so the batch rides on the 128-wide lane axis.
# ----------------------------------------------------------------------------
def widedeep_kernel(wideT_ref, deepT_ref, w1cb_ref, w2T_ref, b2T_ref,
                    w3T_ref, b3T_ref, out_ref):
    tile_b = wideT_ref.shape[-1]
    f32 = jnp.float32

    def leaky(x):
        return jnp.maximum(x, LEAKY_SLOPE * x)

    # ---- single [17, T] one-hot over all categorical columns ---------------
    iota = lax.broadcasted_iota(jnp.int32, (TOTAL_VOCAB, tile_b), 0)
    hit = None
    for k, col in enumerate(EMB_COLS):
        r = DEEP_COLUMNS_IDX[col]
        adj = deepT_ref[r:r + 1, :].astype(jnp.int32) + VOC_OFFSETS[k]  # [1, T]
        m = (iota == adj)
        hit = m if hit is None else (hit | m)
    onehot = hit.astype(f32)                                            # [17, T]

    cont_rows = [deepT_ref[DEEP_COLUMNS_IDX[c]:DEEP_COLUMNS_IDX[c] + 1, :]
                 for c in CONT_COLS]                                    # each [1, T]
    ones = jnp.ones((1, tile_b), f32)                                   # bias row

    # ---- [27, T] feature slab ----------------------------------------------
    feat = jnp.concatenate([wideT_ref[...], onehot] + cont_rows + [ones], axis=0)

    # ---- fused layer 1: deep hidden (rows 0..31) + wide branch (row 32) ----
    # (embedding tables and both biases are pre-folded into w1cb on the host)
    h = leaky(jnp.dot(w1cb_ref[...], feat, preferred_element_type=f32))  # [33, T]
    wide = h[H1:, :]                                                     # [1, T]
    h = h[:H1, :]                                                        # [32, T]

    # ---- deep MLP tail ------------------------------------------------------
    h = leaky(jnp.dot(w2T_ref[...], h, preferred_element_type=f32)
              + b2T_ref[...])                                            # [16, T]
    deep = jnp.dot(w3T_ref[...], h, preferred_element_type=f32) + b3T_ref[...]  # [1, T]

    # ---- combine: sigmoid(wide + deep), lane-dense [1, T] output -----------
    out_ref[...] = jax.nn.sigmoid(wide + deep)


# ----------------------------------------------------------------------------
# Host-side weight folding: embeddings + wide linear + layer-1 bias -> [33,27]
# ----------------------------------------------------------------------------
def build_folded_weights(params):
    # Fold each embedding table through its slice of W1: [num_c, H1]
    pieces = []
    woff = 0
    for c in EMB_COLS:
        num, dim = EMBEDDING_COLUMNS_DICT[c]
        pieces.append(params["emb_" + c] @ params["w1"][woff:woff + dim, :])
        woff += dim
    fold_cat = jnp.concatenate(pieces, axis=0)                       # [17, H1]
    cont_w = params["w1"][woff:, :]                                  # [1,  H1]

    # Feature axis (length 27): wide(8) | one-hot(17) | cont(1) | bias-ones(1)
    deep_cols = jnp.concatenate(
        [jnp.zeros((WIDE_INPUT_DIM, H1), jnp.float32), fold_cat, cont_w,
         params["b1"]], axis=0)                                      # [27, H1]
    wide_cols = jnp.concatenate(
        [params["ww"],
         jnp.zeros((TOTAL_VOCAB + len(CONT_COLS), OUTPUT_DIM), jnp.float32),
         params["wb"].reshape(1, OUTPUT_DIM)], axis=0)               # [27, 1]
    # rows 0..31 = deep hidden units, row 32 = wide output
    w1cb = jnp.concatenate([deep_cols, wide_cols], axis=1).T         # [33, 27]
    return w1cb


# ----------------------------------------------------------------------------
# Wrapper: layout prep + tile selection + pallas_call
# ----------------------------------------------------------------------------
def _round_up(x, m):
    return ((x + m - 1) // m) * m


def widedeep_pallas(wide_data, deep_data, params, tile_b=32768):
    """Full WideDeep forward (eval mode).  Only the [B,F]->[F,B] transposes stay
    in plain JAX; gather, all matmuls, activations, add and sigmoid run fused
    in one batch-tiled Pallas kernel."""
    B = wide_data.shape[0]

    # ---- tile selection ------------------------------------------------------
    b128 = _round_up(B, 128)
    tile_b = max(128, min(_round_up(int(tile_b), 128), b128))
    # keep >= 4 grid steps when there is enough batch, so multi-TC chips (v7x)
    # get work on both TensorCores via dimension_semantics=("parallel",)
    if b128 >= 4 * 128:
        tile_b = min(tile_b, max(128, (b128 // 4) // 128 * 128))
    grid_b = pl.cdiv(b128, tile_b)
    B_pad = grid_b * tile_b

    # ---- transpose to batch-on-lanes layout (one pass each) and pad ---------
    # TODO(synk): if the data pipeline can store inputs as [features, B] these
    # two transposes (and the pad when B % tile_b == 0) disappear entirely.
    wideT = jnp.transpose(wide_data.astype(jnp.float32))            # [8, B]
    deepT = jnp.transpose(deep_data.astype(jnp.float32))            # [4, B]
    pad = B_pad - B
    if pad:
        wideT = jnp.pad(wideT, ((0, 0), (0, pad)))
        deepT = jnp.pad(deepT, ((0, 0), (0, pad)))   # id 0 is always valid

    # ---- folded / packed weights --------------------------------------------
    w1cb = build_folded_weights(params)                              # [33, 27]
    w2T, b2T = params["w2"].T, params["b2"].T                        # [16,32], [16,1]
    w3T, b3T = params["w3"].T, params["b3"].T                        # [1,16],  [1,1]

    def batch_spec(rows):
        return pl.BlockSpec((rows, tile_b), lambda i: (0, i))

    def full_spec(shape):
        return pl.BlockSpec(shape, lambda i: (0,) * len(shape))

    in_specs = [
        batch_spec(WIDE_INPUT_DIM),     # wideT
        batch_spec(N_DEEP_COLS),        # deepT (cat ids + continuous)
        full_spec(w1cb.shape),
        full_spec(w2T.shape), full_spec(b2T.shape),
        full_spec(w3T.shape), full_spec(b3T.shape),
    ]

    # ---- advisory cost estimate (weights fetched once; temps stay in VMEM) --
    weight_bytes = 4 * (w1cb.size + w2T.size + b2T.size + w3T.size + b3T.size)
    cost = pl.CostEstimate(
        flops=2 * B_pad * (FEAT_DIM * (H1 + OUTPUT_DIM) + H1 * H2 + H2 * OUTPUT_DIM),
        transcendentals=B_pad,
        bytes_accessed=4 * B_pad * (WIDE_INPUT_DIM + N_DEEP_COLS + OUTPUT_DIM)
        + weight_bytes,
    )

    # VMEM: ~190 B/row of double-buffered I/O tiles + a few hundred B/row of
    # f32 temporaries (feature slab, one-hot, [33,T]/[16,T] activations).
    # Raise the scoped limit explicitly (v5e default is only ~16 MiB) but stay
    # well under v7x's 64 MiB/TC physical VMEM.
    est_vmem = 900 * tile_b
    vmem_limit = int(min(48 * 1024 * 1024, max(32 * 1024 * 1024, est_vmem)))

    outT = pl.pallas_call(
        widedeep_kernel,
        out_shape=jax.ShapeDtypeStruct((OUTPUT_DIM, B_pad), jnp.float32),
        grid=(grid_b,),
        in_specs=in_specs,
        out_specs=batch_spec(OUTPUT_DIM),
        compiler_params=pltpu.CompilerParams(
            dimension_semantics=("parallel",),
            vmem_limit_bytes=vmem_limit),
        cost_estimate=cost,
    )(wideT, deepT, w1cb, w2T, b2T, w3T, b3T)

    return outT[:, :B].T                                             # [B, OUTPUT_DIM]


# ----------------------------------------------------------------------------
# Deterministic parameter initialization (shapes follow the torch __init__)
# ----------------------------------------------------------------------------
def init_params(key):
    keys = iter(jax.random.split(key, 32))
    params = {}

    def linear(fan_in, fan_out):
        # torch-like uniform(-1/sqrt(fan_in), 1/sqrt(fan_in)); W stored [in, out]
        bound = 1.0 / jnp.sqrt(fan_in)
        w = jax.random.uniform(next(keys), (fan_in, fan_out), jnp.float32,
                               -bound, bound)
        b = jax.random.uniform(next(keys), (1, fan_out), jnp.float32,
                               -bound, bound)
        return w, b

    # Wide model: Linear(wide_input_dim, output_dim)
    params["ww"], params["wb"] = linear(WIDE_INPUT_DIM, OUTPUT_DIM)

    # Deep embeddings
    for col, (num, dim) in EMBEDDING_COLUMNS_DICT.items():
        params["emb_" + col] = jax.random.normal(next(keys), (num, dim),
                                                 jnp.float32)

    # Deep MLP: EMBEDDING_OUT -> 32 -> 16 -> OUTPUT_DIM
    sizes = [EMBEDDING_OUT] + HIDDEN_SIZE_LIST
    params["w1"], params["b1"] = linear(sizes[0], sizes[1])
    params["w2"], params["b2"] = linear(sizes[1], sizes[2])
    params["w3"], params["b3"] = linear(sizes[2], OUTPUT_DIM)
    return params


# ----------------------------------------------------------------------------
# Pure-JAX reference for sanity checking
# ----------------------------------------------------------------------------
def widedeep_reference(wide_data, deep_data, params):
    leaky = lambda x: jnp.where(x > 0, x, LEAKY_SLOPE * x)
    wide = leaky(wide_data.astype(jnp.float32) @ params["ww"] + params["wb"])
    pieces = []
    for col in EMB_COLS:
        idx = DEEP_COLUMNS_IDX[col]
        pieces.append(params["emb_" + col][deep_data[:, idx].astype(jnp.int32)])
    for col in CONT_COLS:
        idx = DEEP_COLUMNS_IDX[col]
        pieces.append(deep_data[:, idx:idx + 1].astype(jnp.float32))
    emb = jnp.concatenate(pieces, axis=1)
    h = leaky(emb @ params["w1"] + params["b1"])
    h = leaky(h @ params["w2"] + params["b2"])
    deep = h @ params["w3"] + params["b3"]
    return jax.nn.sigmoid(wide + deep)


if __name__ == "__main__":
    B = 8
    key = jax.random.PRNGKey(0)
    k_wide, k_age, k_gender, k_career, k_income, k_params = jax.random.split(key, 6)

    # Wide input: dense float features [B, WIDE_INPUT_DIM]
    wide_data = jax.random.normal(k_wide, (B, WIDE_INPUT_DIM), jnp.float32)

    # Deep input: [B, 4] float tensor; cols 0..2 hold integer category ids,
    # col 3 is a continuous feature (mirrors the torch x[:, idx].long() usage).
    age = jax.random.randint(k_age, (B,), 0, EMBEDDING_COLUMNS_DICT["age"][0])
    gender = jax.random.randint(k_gender, (B,), 0, EMBEDDING_COLUMNS_DICT["gender"][0])
    career = jax.random.randint(k_career, (B,), 0, EMBEDDING_COLUMNS_DICT["career"][0])
    income = jax.random.normal(k_income, (B,), jnp.float32)
    deep_data = jnp.stack(
        [age.astype(jnp.float32), gender.astype(jnp.float32),
         career.astype(jnp.float32), income], axis=1)

    params = init_params(k_params)

    out = widedeep_pallas(wide_data, deep_data, params)
    out = jax.block_until_ready(out)

    ref = widedeep_reference(wide_data, deep_data, params)
    assert out.shape == (B, OUTPUT_DIM)
    assert jnp.allclose(out, ref, atol=1e-5, rtol=1e-5), "mismatch vs reference"

    print("KERNEL_OK")
</pallas_src>

<mosaic_0001>
module attributes {stable_mosaic.version = 11 : i64} {
  func.func @widedeep_kernel(%arg0: i32, %arg1: memref<8x128xf32, #tpu.memory_space<vmem>>, %arg2: memref<4x128xf32, #tpu.memory_space<vmem>>, %arg3: memref<33x27xf32, #tpu.memory_space<vmem>>, %arg4: memref<16x32xf32, #tpu.memory_space<vmem>>, %arg5: memref<16x1xf32, #tpu.memory_space<vmem>>, %arg6: memref<1x16xf32, #tpu.memory_space<vmem>>, %arg7: memref<1x1xf32, #tpu.memory_space<vmem>>, %arg8: memref<1x128xf32, #tpu.memory_space<vmem>>) attributes {dimension_semantics = [#tpu.dimension_semantics<parallel>], iteration_bounds = array<i64: 1>, scalar_prefetch = 0 : i64, scratch_operands = 0 : i64, tpu.core_type = #tpu.core_type<tc>, window_params = [{transform_indices = @transform_0, window_bounds = array<i64: 8, 128>}, {transform_indices = @transform_1, window_bounds = array<i64: 4, 128>}, {pipeline_mode = #tpu.pipeline_mode<synchronous>, transform_indices = @transform_2, window_bounds = array<i64: 33, 27>}, {pipeline_mode = #tpu.pipeline_mode<synchronous>, transform_indices = @transform_3, window_bounds = array<i64: 16, 32>}, {pipeline_mode = #tpu.pipeline_mode<synchronous>, transform_indices = @transform_4, window_bounds = array<i64: 16, 1>}, {pipeline_mode = #tpu.pipeline_mode<synchronous>, transform_indices = @transform_5, window_bounds = array<i64: 1, 16>}, {pipeline_mode = #tpu.pipeline_mode<synchronous>, transform_indices = @transform_6, window_bounds = array<i64: 1, 1>}, {transform_indices = @transform_7, window_bounds = array<i64: 1, 128>}]} {
    %0 = tpu.iota {dimensions = array<i32: 0>} : vector<17x128xi32>
    %c0 = arith.constant 0 : index
    %c0_0 = arith.constant 0 : index
    %1 = vector.load %arg2[%c0, %c0_0] : memref<4x128xf32, #tpu.memory_space<vmem>>, vector<1x128xf32>
    %2 = arith.fptosi %1 : vector<1x128xf32> to vector<1x128xi32>
    %c0_i32 = arith.constant 0 : i32
    %3 = vector.broadcast %c0_i32 : i32 to vector<1x128xi32>
    %4 = arith.addi %2, %3 : vector<1x128xi32>
    %5 = vector.broadcast %4 : vector<1x128xi32> to vector<17x128xi32>
    %6 = arith.cmpi eq, %0, %5 : vector<17x128xi32>
    %c1 = arith.constant 1 : index
    %c0_1 = arith.constant 0 : index
    %7 = vector.load %arg2[%c1, %c0_1] : memref<4x128xf32, #tpu.memory_space<vmem>>, vector<1x128xf32>
    %8 = arith.fptosi %7 : vector<1x128xf32> to vector<1x128xi32>
    %c10_i32 = arith.constant 10 : i32
    %9 = vector.broadcast %c10_i32 : i32 to vector<1x128xi32>
    %10 = arith.addi %8, %9 : vector<1x128xi32>
    %11 = vector.broadcast %10 : vector<1x128xi32> to vector<17x128xi32>
    %12 = arith.cmpi eq, %0, %11 : vector<17x128xi32>
    %13 = arith.ori %6, %12 : vector<17x128xi1>
    %c2 = arith.constant 2 : index
    %c0_2 = arith.constant 0 : index
    %14 = vector.load %arg2[%c2, %c0_2] : memref<4x128xf32, #tpu.memory_space<vmem>>, vector<1x128xf32>
    %15 = arith.fptosi %14 : vector<1x128xf32> to vector<1x128xi32>
    %c12_i32 = arith.constant 12 : i32
    %16 = vector.broadcast %c12_i32 : i32 to vector<1x128xi32>
    %17 = arith.addi %15, %16 : vector<1x128xi32>
    %18 = vector.broadcast %17 : vector<1x128xi32> to vector<17x128xi32>
    %19 = arith.cmpi eq, %0, %18 : vector<17x128xi32>
    %20 = arith.ori %13, %19 : vector<17x128xi1>
    %21 = arith.extui %20 : vector<17x128xi1> to vector<17x128xi32>
    %22 = arith.sitofp %21 : vector<17x128xi32> to vector<17x128xf32>
    %c3 = arith.constant 3 : index
    %c0_3 = arith.constant 0 : index
    %23 = vector.load %arg2[%c3, %c0_3] : memref<4x128xf32, #tpu.memory_space<vmem>>, vector<1x128xf32>
    %cst = arith.constant 1.000000e+00 : f32
    %24 = vector.broadcast %cst : f32 to vector<1x128xf32>
    %c0_4 = arith.constant 0 : index
    %c0_5 = arith.constant 0 : index
    %25 = vector.load %arg1[%c0_4, %c0_5] : memref<8x128xf32, #tpu.memory_space<vmem>>, vector<8x128xf32>
    %26 = tpu.concatenate %25, %22, %23, %24 in 0 : vector<8x128xf32>, vector<17x128xf32>, vector<1x128xf32>, vector<1x128xf32> -> vector<27x128xf32>
    %c0_6 = arith.constant 0 : index
    %c0_7 = arith.constant 0 : index
    %27 = vector.load %arg3[%c0_6, %c0_7] : memref<33x27xf32, #tpu.memory_space<vmem>>, vector<33x27xf32>
    %cst_8 = arith.constant dense<0.000000e+00> : vector<33x128xf32>
    %28 = tpu.matmul %27, %26, %cst_8 {dimension_numbers = #tpu.dot_dimension_numbers<[1], [0], [0], [1], [0, 0, 1, 1], [], []>} : vector<33x27xf32>, vector<27x128xf32>, vector<33x128xf32> -> vector<33x128xf32>
    %cst_9 = arith.constant 0.00999999977 : f32
    %29 = vector.broadcast %cst_9 : f32 to vector<33x128xf32>
    %30 = arith.mulf %29, %28 : vector<33x128xf32>
    %31 = arith.maximumf %28, %30 : vector<33x128xf32>
    %32 = vector.extract_strided_slice %31 {offsets = [32, 0], sizes = [1, 128], strides = [1, 1]} : vector<33x128xf32> to vector<1x128xf32>
    %33 = vector.extract_strided_slice %31 {offsets = [0, 0], sizes = [32, 128], strides = [1, 1]} : vector<33x128xf32> to vector<32x128xf32>
    %c0_10 = arith.constant 0 : index
    %c0_11 = arith.constant 0 : index
    %34 = vector.load %arg4[%c0_10, %c0_11] : memref<16x32xf32, #tpu.memory_space<vmem>>, vector<16x32xf32>
    %cst_12 = arith.constant dense<0.000000e+00> : vector<16x128xf32>
    %35 = tpu.matmul %34, %33, %cst_12 {dimension_numbers = #tpu.dot_dimension_numbers<[1], [0], [0], [1], [0, 0, 1, 1], [], []>} : vector<16x32xf32>, vector<32x128xf32>, vector<16x128xf32> -> vector<16x128xf32>
    %c0_13 = arith.constant 0 : index
    %c0_14 = arith.constant 0 : index
    %36 = vector.load %arg5[%c0_13, %c0_14] : memref<16x1xf32, #tpu.memory_space<vmem>>, vector<16x1xf32>
    %37 = vector.broadcast %36 : vector<16x1xf32> to vector<16x128xf32>
    %38 = arith.addf %35, %37 : vector<16x128xf32>
    %cst_15 = arith.constant 0.00999999977 : f32
    %39 = vector.broadcast %cst_15 : f32 to vector<16x128xf32>
    %40 = arith.mulf %39, %38 : vector<16x128xf32>
    %41 = arith.maximumf %38, %40 : vector<16x128xf32>
    %c0_16 = arith.constant 0 : index
    %c0_17 = arith.constant 0 : index
    %42 = vector.load %arg6[%c0_16, %c0_17] : memref<1x16xf32, #tpu.memory_space<vmem>>, vector<1x16xf32>
    %cst_18 = arith.constant dense<0.000000e+00> : vector<1x128xf32>
    %43 = tpu.matmul %42, %41, %cst_18 {dimension_numbers = #tpu.dot_dimension_numbers<[1], [0], [0], [1], [0, 0, 1, 1], [], []>} : vector<1x16xf32>, vector<16x128xf32>, vector<1x128xf32> -> vector<1x128xf32>
    %c0_19 = arith.constant 0 : index
    %c0_20 = arith.constant 0 : index
    %44 = vector.load %arg7[%c0_19, %c0_20] : memref<1x1xf32, #tpu.memory_space<vmem>>, vector<1x1xf32>
    %45 = vector.broadcast %44 : vector<1x1xf32> to vector<1x128xf32>
    %46 = arith.addf %43, %45 : vector<1x128xf32>
    %47 = arith.addf %32, %46 : vector<1x128xf32>
    %48 = arith.negf %47 : vector<1x128xf32>
    %49 = math.exp %48 : vector<1x128xf32>
    %cst_21 = arith.constant 1.000000e+00 : f32
    %50 = vector.broadcast %cst_21 : f32 to vector<1x128xf32>
    %51 = arith.addf %50, %49 : vector<1x128xf32>
    %52 = arith.divf %50, %51 : vector<1x128xf32>
    %c0_22 = arith.constant 0 : index
    %c0_23 = arith.constant 0 : index
    %53 = vector.load %arg8[%c0_22, %c0_23] : memref<1x128xf32, #tpu.memory_space<vmem>>, vector<1x128xf32>
    tpu.vector_store %arg8[%c0_22, %c0_23], %52 {strides = array<i32>} : memref<1x128xf32, #tpu.memory_space<vmem>>, vector<1x128xf32>,
    return
  }
  func.func @transform_0(%arg0: i32) -> (i32, i32) {
    %c0_i32 = arith.constant 0 : i32
    %c0_i32_0 = arith.constant 0 : i32
    return %c0_i32, %arg0 : i32, i32
  }
  func.func @transform_1(%arg0: i32) -> (i32, i32) {
    %c0_i32 = arith.constant 0 : i32
    %c0_i32_0 = arith.constant 0 : i32
    return %c0_i32, %arg0 : i32, i32
  }
  func.func @transform_2(%arg0: i32) -> (i32, i32) {
    %c0_i32 = arith.constant 0 : i32
    %c0_i32_0 = arith.constant 0 : i32
    %c0_i32_1 = arith.constant 0 : i32
    return %c0_i32, %c0_i32_0 : i32, i32
  }
  func.func @transform_3(%arg0: i32) -> (i32, i32) {
    %c0_i32 = arith.constant 0 : i32
    %c0_i32_0 = arith.constant 0 : i32
    %c0_i32_1 = arith.constant 0 : i32
    return %c0_i32, %c0_i32_0 : i32, i32
  }
  func.func @transform_4(%arg0: i32) -> (i32, i32) {
    %c0_i32 = arith.constant 0 : i32
    %c0_i32_0 = arith.constant 0 : i32
    %c0_i32_1 = arith.constant 0 : i32
    return %c0_i32, %c0_i32_0 : i32, i32
  }
  func.func @transform_5(%arg0: i32) -> (i32, i32) {
    %c0_i32 = arith.constant 0 : i32
    %c0_i32_0 = arith.constant 0 : i32
    %c0_i32_1 = arith.constant 0 : i32
    return %c0_i32, %c0_i32_0 : i32, i32
  }
  func.func @transform_6(%arg0: i32) -> (i32, i32) {
    %c0_i32 = arith.constant 0 : i32
    %c0_i32_0 = arith.constant 0 : i32
    %c0_i32_1 = arith.constant 0 : i32
    return %c0_i32, %c0_i32_0 : i32, i32
  }
  func.func @transform_7(%arg0: i32) -> (i32, i32) {
    %c0_i32 = arith.constant 0 : i32
    %c0_i32_0 = arith.constant 0 : i32
    return %c0_i32, %arg0 : i32, i32
  }
}

</mosaic_0001>

<bundles_post_ra>
// kernel: tpu_custom_call.1
= control target key start
LH: loop header
LB: loop body
LE: loop exit
PB: predicated region body
PF: predicated region fallthrough
CT: control target
= control target key end

     0   :  { %s687_s0 = inlined_call_operand.vmem [shape: f32[8,128], index: 0, kind: input, shape index: {}]   ;;  %s688_s1 = inlined_call_operand.vmem [shape: f32[4,128], index: 1, kind: input, shape index: {}]   ;;  %s689_s2 = inlined_call_operand.vmem [shape: f32[33,27], index: 2, kind: input, shape index: {}]   ;;  %s690_s3 = inlined_call_operand.vmem [shape: f32[16,32], index: 3, kind: input, shape index: {}]   ;;  %s691_s4 = inlined_call_operand.vmem [shape: f32[16,1], index: 4, kind: input, shape index: {}]   ;;  %s692_s5 = inlined_call_operand.vmem [shape: f32[1,16], index: 5, kind: input, shape index: {}]   ;;  %s693_s6 = inlined_call_operand.<no memory space> [shape: f32[1,1], index: 6, kind: input, shape index: {}]   ;;  %s694_s7 = inlined_call_operand.hbm [shape: f32[1,128], index: 7, kind: output, shape index: {}]  }
   0x1   :  { %v12_v0 = vstv %s693_s6 }
   0x2   :  { %13 = vst [vmem:[#allocation2] sm:$0x1] %v12_v0 }
   0x3   :  { %v29_v1 = vlaneseq  ;;  %v33_v2 = vld [vmem:[%s688_s1] sm:$0x1]  ;;  %v42_v3 = vld [vmem:[%s688_s1 + $0x1] sm:$0x1]  ;;  %v551_v4 = vmov 0.0|0.0  }
   0x4   :  { %489 = vmatprep.subr.bf16.mxu0 %v551_v4  ;;  %v508_v5 = vtrunc.f32 %v33_v2  ;;  %v510_v6 = vtrunc.f32 %v42_v3  ;;  %v55_v7 = vld [vmem:[%s688_s1 + $0x2] sm:$0x1] }
   0x5   :  { %v30_v8 = vshrl.u32 %v29_v1, 7  ;;  %v512_v9 = vtrunc.f32 %v55_v7 }
   0x6   :  { %v509_v10 = vcvt.f32.s32 %v508_v5  ;;  %v511_v11 = vcvt.f32.s32 %v510_v6 }
   0x7   :  { %14 = vsyncpa [#allocation4], 0  ;;  %v32_v12 = vadd.s32 16, %v30_v8  ;;  %v611_v13 = vsub.s32 0, %v30_v8  ;;  %v513_v14 = vcvt.f32.s32 %v512_v9  ;;  %vm695_vm0 = vmmov 0   ;;  %v75_v22 = vld [vmem:[%s687_s0] sm:$0xff] }
   0x8   :  { %v44_v15 = vadd.s32 10, %v511_v11  ;;  %v553_v18 = vmov 0.0   ;;  %v74_v21 = vld [vmem:[%s688_s1 + $0x3] sm:$0x1]  ;;  %v31_v23 = vadd.s32 8, %v30_v8  ;;  %v554_v25 = vmov 1.0  }
   0x9   :  { %v38_v16 = vrot.slane %v509_v10, %v611_v13  ;;  %v57_v17 = vadd.s32 12, %v513_v14  ;;  %456 = vmatprep.mubr.msk.f32.mxu0 %vm695_vm0, %v553_v18  ;;  %v77_v24 = vrot.slane %v74_v21, 7  ;;  %v490_v26 = vpack.c.bf16 %v554_v25, %v75_v22  ;;  %v83_v31 = vld [vmem:[%s689_s2] sm:$0xff]  ;;  %v84_v32 = vld [vmem:[%s689_s2 + $0x8] sm:$0xff]  ;;  %v85_v33 = vld [vmem:[%s689_s2 + $0x10] sm:$0xff] }
   0xa   :  { %v48_v19 = vrot.slane %v44_v15, %v611_v13  ;;  %vm79_vm10 = vcmask 1040384   ;;  %vm81_vm14 = vcmask 1041408   ;;  %vm555_vm0 = vmmov 1   ;;  %v86_v34 = vld [vmem:[%s689_s2 + $0x18] sm:$0xff]  ;;  %v208_v35 = vld [vmem:[%s690_s3] sm:$0xff]  ;;  %v211_v38 = vld [vmem:[%s691_s4 + $0x8] sm:$0xff] }
   0xb   :  { %vm39_vm1 = vcmp.eq.s32.totalorder %v30_v8, %v38_v16  ;;  %vm41_vm2 = vcmp.eq.s32.totalorder %v32_v12, %v38_v16  ;;  %v61_v20 = vrot.slane %v57_v17, %v611_v13  ;;  %vm40_vm11 = vcmp.eq.s32.totalorder %v31_v23, %v38_v16  ;;  %v210_v36 = vld [vmem:[%s691_s4] sm:$0xff]  ;;  %v209_v57 = vld [vmem:[%s690_s3 + $0x8] sm:$0xff] }
   0xc   :  { %vm49_vm3 = vcmp.eq.s32.totalorder %v30_v8, %v48_v19  ;;  %vm51_vm4 = vcmp.eq.s32.totalorder %v32_v12, %v48_v19  ;;  %vm50_vm12 = vcmp.eq.s32.totalorder %v31_v23, %v48_v19  ;;  %v556_v37 = vmov 0   ;;  %v87_v58 = vld [vmem:[%s689_s2 + $0x20] sm:$0x1]  ;;  %s557_s2 = smov [#allocation3]  }
   0xd   :  { %vm52_vm5 = vmor %vm39_vm1, %vm49_vm3  ;;  %vm62_vm6 = vcmp.eq.s32.totalorder %v30_v8, %v61_v20  ;;  %vm64_vm7 = vcmp.eq.s32.totalorder %v32_v12, %v61_v20  ;;  %vm63_vm15 = vcmp.eq.s32.totalorder %v31_v23, %v61_v20  ;;  %vm104_vm3 = vcmask 1042432   ;;  %521 = vset.pattern.permute.xlu0 %v556_v37  ;;  %522 = vset.pattern.permute.xlu1 %v556_v37  ;;  %v309_v59 = vld [vmem:[#allocation2] sm:$0x1] }
   0xe   :  { %vm54_vm8 = vmor %vm41_vm2, %vm51_vm4  ;;  %214 = vperm.xlu0 %521, %v210_v36   ;;  %312 = vperm.xlu1 %522, %v309_v59   ;;  %v308_v7 = vld [vmem:[%s692_s5] sm:$0x1]  ;;  %s407_s5 = sshll.u32 %s557_s2, 4  ;;  %s408_s5 = int_to_ptr.vmem [resolvable:$true] %s407_s5 }
   0xf   :  { %vm65_vm9 = vmor %vm52_vm5, %vm62_vm6  ;;  %vm88_vm6 = vcmask 220160   ;;  %s527_s28 = scalar_lea.vmem %s408_s5, 16  ;;  %s531_s29 = scalar_lea.vmem %s408_s5, 32 }
  0x10   :  { %vm67_vm13 = vmor %vm54_vm8, %vm64_vm7  ;;  %vm222_vm7 = vcmask 261120   ;;  %vm319_vm8 = vcmask 130048   ;;  %p528_p0 = scmp.ne.s32.totalorder %s408_s5, %s527_s28  ;;  %p532_p1 = scmp.lt.s32.totalorder %s408_s5, %s408_s5 }
  0x11   :  { %v417_v27 = vsel %vm67_vm13, 1.0, %v553_v18  ;;  %vm491_vm1 = vmpackc.low %vm65_vm9, %vm555_vm0  ;;  %vm697_vm0 = vmmov 0   ;;  %479 = vmatprep.mubr.msk.f32.mxu1 %vm222_vm7, %v208_v35  ;;  %p533_p2 = scmp.lt.s32.totalorder %s531_s29, %s527_s28 }
  0x12   :  { %v80_v28 = vsel %vm79_vm10, %v417_v27, %v77_v24  ;;  %492 = vmatpush3.bf16.msk.msra.mxu0 %vm491_vm1, %v490_v26  ;;  %vm53_vm2 = vmor %vm40_vm11, %vm50_vm12  ;;  %219 = vperm.xlu0 %521, %v211_v38  }
  0x13   :  { %v82_v29 = vsel %vm81_vm14, %v80_v28, 1.0  ;;  %493 = vmatprep.subr.bf16.mxu0 %v551_v4  ;;  %vm66_vm4 = vmor %vm53_vm2, %vm63_vm15  ;;  %p534_p3 = por %p533_p2, %p532_p1 }
  0x14   :  { %v494_v30 = vpack.c.bf16 %v82_v29, %v554_v25  ;;  %vm495_vm5 = vmpackc.low %vm104_vm3, %vm66_vm4 }
  0x15   :  { %p535_p4 = pnand %p534_p3, %p528_p0 }
  0x16   :  { %496 = vmatpush3.bf16.msk.msra.mxu0 %vm495_vm5, %v494_v30 }
  0x19   :  { %457 = vmatmul.mubr.msk.f32.vlgmr.msra.gmra.mrb[0].mxu0 %vm88_vm6, %v83_v31 }
  0x1a   :  { %459 = vmatprep.mubr.msk.f32.mxu0 %vm697_vm0, %v553_v18 }
  0x1d   :  { %460 = vmatmul.mubr.msk.f32.gmra.mrb[2].mxu0 %vm88_vm6, %v84_v32 }
  0x1e   :  { %462 = vmatprep.mubr.msk.f32.mxu0 %vm697_vm0, %v553_v18 }
  0x21   :  { %463 = vmatmul.mubr.msk.f32.gmra.mrb[4].mxu0 %vm88_vm6, %v85_v33 }
  0x22   :  { %465 = vmatprep.mubr.msk.f32.mxu0 %vm697_vm0, %v553_v18 }
  0x25   :  { %466 = vmatmul.mubr.msk.f32.gmra.mrb[6].mxu0 %vm88_vm6, %v86_v34 }
  0x26   :  { %468 = vmatprep.mubr.msk.f32.mxu0 %vm697_vm0, %v553_v18 }
  0x29   :  { %469 = vmatmul.mubr.msk.f32.gmra.mrb[8].mxu0 %vm88_vm6, %v87_v58 }
  0x8d   :  { %v215_v60 = vpop.permute.xlu0 %214  ;;  %v313_v10 = vpop.permute.xlu1 %312 }
  0x8e   :  { %v318_v12 = vrot.slane %v313_v10, %v611_v13 }
  0x91   :  { %v220_v61 = vpop.permute.xlu0 %219 }
  0xec   :  { %v174_v39 = vpop.f32.mrb[0].mxu0 }
  0xed   :  { %v458_v40 = vpop.f32.mrb[1].mxu0  ;;  %v198_v41 = vmul.f32 0.01, %v174_v39 }
  0xef   :  { %v203_v45 = vmax.f32 %v174_v39, %v198_v41 }
  0xf0   :  { %v179_v42 = vpop.f32.mrb[2].mxu0 }
  0xf1   :  { %v199_v43 = vmul.f32 0.01, %v179_v42  ;;  %v461_v44 = vpop.f32.mrb[3].mxu0 }
  0xf3   :  { %v204_v46 = vmax.f32 %v179_v42, %v199_v43 }
  0xf4   :  { %v184_v47 = vpop.f32.mrb[4].mxu0 }
  0xf5   :  { %v464_v48 = vpop.f32.mrb[5].mxu0  ;;  %v497_v49 = vpack.c.bf16 %v204_v46, %v203_v45  ;;  %v200_v50 = vmul.f32 0.01, %v184_v47 }
  0xf7   :  { %498 = vmatprep.subr.bf16.mxu1 %v497_v49  ;;  %v205_v54 = vmax.f32 %v184_v47, %v200_v50 }
  0xf8   :  { %v189_v51 = vpop.f32.mrb[6].mxu0  ;;  %500 = vmatpush3.bf16.msra.mxu1 %v497_v49 }
  0xf9   :  { %v201_v52 = vmul.f32 0.01, %v189_v51  ;;  %v467_v53 = vpop.f32.mrb[7].mxu0 }
  0xfb   :  { %v206_v55 = vmax.f32 %v189_v51, %v201_v52 }
  0xfc   :  { %v194_v8 = vpop.f32.mrb[8].mxu0 }
  0xfd   :  { %v501_v56 = vpack.c.bf16 %v206_v55, %v205_v54  ;;  %v470_v9 = vpop.f32.mrb[9].mxu0  ;;  %v202_v11 = vmul.f32 0.01, %v194_v8 }
  0xff   :  { %502 = vmatprep.subr.bf16.mxu1 %v501_v56  ;;  %v207_v15 = vmax.f32 %v194_v8, %v202_v11 }
 0x100   :  { %504 = vmatpush3.bf16.msra.mxu1 %v501_v56 }
 0x101   :  { %505 = vmatprep.subr.bf16.mxu1 %v551_v4 }
 0x103   :  { %480 = vmatmul.mubr.msk.f32.vlgmr.msra.gmra.mrb[0].mxu1 %vm222_vm7, %v209_v57 }
 0x104   :  { %486 = vmatprep.mubr.msk.f32.mxu1 %vm697_vm0, %v553_v18 }
 0x1d6   :  { %v481_v62 = vpop.f32.mrb[0].mxu1 }
 0x1d7   :  { %v301_v63 = vadd.f32 %v481_v62, %v220_v61  ;;  %v295_v0 = vpop.f32.mrb[1].mxu1 }
 0x1d8   :  { %v296_v1 = vadd.f32 %v295_v0, %v215_v60 }
 0x1d9   :  { %v305_v2 = vmul.f32 0.01, %v301_v63 }
 0x1da   :  { %v304_v3 = vmul.f32 0.01, %v296_v1 }
 0x1db   :  { %v307_v4 = vmax.f32 %v301_v63, %v305_v2 }
 0x1dc   :  { %v306_v5 = vmax.f32 %v296_v1, %v304_v3 }
 0x1de   :  { %v506_v6 = vpack.c.bf16 %v307_v4, %v306_v5 }
 0x1e0   :  { %507 = vmatpush3.bf16.msra.mxu1 %v506_v6 }
 0x1e3   :  { %487 = vmatmul.mubr.msk.f32.vlgmr.msra.gmra.mrb[2].mxu1 %vm319_vm8, %v308_v7 }
 0x2b6   :  { %v389_v14 = vpop.f32.mrb[2].mxu1 }
 0x2b7   :  { %v390_v16 = vadd.f32 %v389_v14, %v318_v12  ;;  %v488_v17 = vpop.f32.mrb[3].mxu1 }
 0x2b9   :  { %v393_v18 = vadd.f32 %v390_v16, %v207_v15 }
 0x2bb   :  { %v429_v19 = vmul.f32 -1.442695, %v393_v18 }
 0x2bd   :  { %523 = vpow2.f32 %v429_v19 }
 0x2c7   :  { %v524_v20 = vpop.eup %523 }
 0x2c8   :  { %v397_v21 = vadd.f32 1.0, %v524_v20 }
 0x2ca   :  { %525 = vrcp.f32 %v397_v21 }
 0x2d4   :  { %v526_v22 = vpop.eup %525 }
 0x2d5   :  { %400 = vst [vmem:[#allocation3] sm:$0x1] %v526_v22 }
 0x2d6   :  { %538 = shalt.err (!%p535_p4)
}
 0x2d7   :  { %s539_s6 = scalar_lea.hbm %s694_s7, 16 }
 0x2d8   :  { %p540_p5 = scmp.ne.s32.totalorder %s694_s7, %s539_s6  ;;  %p543_p6 = scmp.lt.u32.totalorder %s539_s6, %s694_s7 }
 0x2da   :  { %p545_p7 = pnand %p543_p6, %p540_p5 }
 0x2dc   :  { %548 = shalt.err (!%p545_p7)
}
 0x2dd   :  { %410 = dma.vmem_to_hbm [thread:$0]  %s408_s5, 16, %s694_s7, [#allocation4]  }
 0x2de   :  { %549 = dma.done.wait [#allocation4], 16  }
 0x2df   :  { %550 = vsyncadd [#allocation4], 4294967280 }
 0x2e0   :  { %414 = vsyncpa [#allocation4], 1 }

</bundles_post_ra>
